<compile_context>
chip_gen: v7x
topology: tpu7x:2x2x1
jax: 0.10.0
libtpu: 0.0.40
codegen_flags: <defaults>
</compile_context>

<pallas_src>
import functools
import math

import jax
import jax.numpy as jnp
from jax.experimental import pallas as pl
from jax.experimental.pallas import tpu as pltpu


def _round_up(a: int, b: int) -> int:
    return (a + b - 1) // b * b


def _spatio_conv_kernel(x_ref, w_ref, b_ref, o_ref, *, c, n, npad, compute_dtype):
    # x_ref: (1, C, TT, N)     native-layout input block (also the residual)
    # w_ref: (C, N, C*Npad)    fused operator W[i, m, o*Npad + n]
    # b_ref: (C,)              per-output-channel bias, f32 scalars in SMEM
    # o_ref: (1, C, TT, N)     native-layout output block
    x_blk = x_ref[0]                               # (C, TT, N), input dtype (f32)
    x_mx = x_blk.astype(compute_dtype)             # MXU operand dtype (bf16 default)

    # Fused graph-conv + channel-mix: contract over (input channel i, node m).
    # C plain 2-D MXU dots, f32 accumulation.
    acc = jnp.dot(x_mx[0], w_ref[0], preferred_element_type=jnp.float32)
    for i in range(1, c):                          # static loop, C is small
        acc = acc + jnp.dot(x_mx[i], w_ref[i], preferred_element_type=jnp.float32)

    # f32 epilogue: + bias + residual, ReLU.  Output-channel o occupies lanes
    # [o*Npad, o*Npad + N) of acc (128-aligned group start -> cheap slices).
    for o in range(c):
        y = acc[:, o * npad:o * npad + n] + b_ref[o] + x_blk[o].astype(jnp.float32)
        o_ref[0, o] = jnp.maximum(y, 0.0).astype(o_ref.dtype)


def spatio_conv_layer(x, Lk, theta, bias, *, compute_dtype=jnp.bfloat16):
    """x: (B, C, T, N); Lk: (Ks, N, N); theta: (C, C, Ks); bias: (1, C, 1, 1)."""
    B, C, T, N = x.shape
    Npad = _round_up(N, 128)                       # lane-aligned group per output channel

    # --- time tiling: whole T per block (STGCN blocks are small).  If B == 1,
    # split T so the grid still has >= 2 "parallel" steps (feeds both v7x TCs);
    # only tiles that satisfy the (8, 128) block constraint are used.
    TT = T
    if B < 2 and T % 16 == 0:
        TT = T // 2
    NT = T // TT

    # --- parameter prep (tiny, parameter-sized; activations are untouched) ---
    # W[i, m, o*Npad + n] = sum_k theta[i, o, k] * Lk[k, n, m], n zero-padded.
    Lk_p = jnp.pad(Lk, ((0, 0), (0, Npad - N), (0, 0)))          # (Ks, Npad, N)
    W4 = jnp.einsum("iok,knm->imon", theta, Lk_p,
                    precision=jax.lax.Precision.HIGHEST)         # (C, N, C, Npad)
    W = W4.reshape(C, N, C * Npad).astype(compute_dtype)
    b_vec = bias.reshape(C).astype(jnp.float32)                  # SMEM scalars

    kernel = functools.partial(_spatio_conv_kernel, c=C, n=N, npad=Npad,
                               compute_dtype=compute_dtype)

    return pl.pallas_call(
        kernel,
        out_shape=jax.ShapeDtypeStruct((B, C, T, N), x.dtype),
        grid=(B, NT),
        in_specs=[
            pl.BlockSpec((1, C, TT, N), lambda b, t: (b, 0, t, 0)),
            pl.BlockSpec((C, N, C * Npad), lambda b, t: (0, 0, 0)),
            pl.BlockSpec(memory_space=pltpu.MemorySpace.SMEM),
        ],
        out_specs=pl.BlockSpec((1, C, TT, N), lambda b, t: (b, 0, t, 0)),
        compiler_params=pltpu.CompilerParams(
            dimension_semantics=("parallel", "parallel"),   # megacore / v7x 2-TC sharding
            vmem_limit_bytes=48 * 1024 * 1024,              # safe on v5e/v6e/v7x (64 MiB/TC)
        ),
    )(x, W, b_vec)


def spatio_conv_layer_ref(x, Lk, theta, bias):
    """Pure-JAX reference mirroring the PyTorch einsums."""
    x_c = jnp.einsum("knm,bitm->bitkn", Lk, x,
                     precision=jax.lax.Precision.HIGHEST)
    x_gc = jnp.einsum("iok,bitkn->botn", theta, x_c,
                      precision=jax.lax.Precision.HIGHEST) + bias
    return jax.nn.relu(x_gc + x)


if __name__ == "__main__":
    B, C, T, N, Ks = 2, 4, 8, 16, 3

    key = jax.random.PRNGKey(0)
    k_x, k_lk, k_th, k_b = jax.random.split(key, 4)

    x = jax.random.normal(k_x, (B, C, T, N), dtype=jnp.float32)

    # Deterministic "graph kernel" stack Lk (ks, n, n): scaled random symmetric.
    A = jax.random.normal(k_lk, (Ks, N, N), dtype=jnp.float32)
    Lk = 0.5 * (A + jnp.transpose(A, (0, 2, 1))) / math.sqrt(N)

    # Parameter init mimicking nn.init.kaiming_uniform_(a=sqrt(5)) + uniform bias.
    fan_in = C * Ks
    bound = 1.0 / math.sqrt(fan_in)
    theta = jax.random.uniform(k_th, (C, C, Ks), jnp.float32, -bound, bound)
    bias = jax.random.uniform(k_b, (1, C, 1, 1), jnp.float32, -bound, bound)

    ref = spatio_conv_layer_ref(x, Lk, theta, bias)

    # Default bf16 MXU path (f32 accumulate + f32 epilogue).
    out = jax.block_until_ready(spatio_conv_layer(x, Lk, theta, bias))
    assert out.shape == (B, C, T, N)
    assert jnp.allclose(out, ref, atol=5e-2, rtol=5e-2), "bf16 mismatch vs reference"

    # Full f32 path: tight match vs reference.
    out_f32 = jax.block_until_ready(
        spatio_conv_layer(x, Lk, theta, bias, compute_dtype=jnp.float32))
    assert jnp.allclose(out_f32, ref, atol=1e-5, rtol=1e-5), "f32 mismatch vs reference"

    print("KERNEL_OK")
</pallas_src>

<mosaic_0001>
module attributes {stable_mosaic.version = 11 : i64} {
  func.func @_spatio_conv_kernel(%arg0: i32, %arg1: i32, %arg2: memref<1x4x8x16xf32, #tpu.memory_space<vmem>>, %arg3: memref<4x16x512xbf16, #tpu.memory_space<vmem>>, %arg4: memref<4xf32, #tpu.memory_space<smem>>, %arg5: memref<1x4x8x16xf32, #tpu.memory_space<vmem>>) attributes {dimension_semantics = [#tpu.dimension_semantics<parallel>, #tpu.dimension_semantics<parallel>], iteration_bounds = array<i64: 2, 1>, scalar_prefetch = 0 : i64, scratch_operands = 0 : i64, tpu.core_type = #tpu.core_type<tc>, window_params = [{transform_indices = @transform_0, window_bounds = array<i64: 1, 4, 8, 16>}, {pipeline_mode = #tpu.pipeline_mode<synchronous>, transform_indices = @transform_1, window_bounds = array<i64: 4, 16, 512>}, {transform_indices = @transform_2, window_bounds = array<i64: 4>}, {transform_indices = @transform_3, window_bounds = array<i64: 1, 4, 8, 16>}]} {
    %c0 = arith.constant 0 : index
    %c0_0 = arith.constant 0 : index
    %c0_1 = arith.constant 0 : index
    %c0_2 = arith.constant 0 : index
    %0 = vector.load %arg2[%c0, %c0_0, %c0_1, %c0_2] : memref<1x4x8x16xf32, #tpu.memory_space<vmem>>, vector<1x4x8x16xf32>
    %1 = vector.shape_cast %0 : vector<1x4x8x16xf32> to vector<4x8x16xf32>
    %2 = arith.truncf %1 : vector<4x8x16xf32> to vector<4x8x16xbf16>
    %3 = vector.extract_strided_slice %2 {offsets = [0, 0, 0], sizes = [1, 8, 16], strides = [1, 1, 1]} : vector<4x8x16xbf16> to vector<1x8x16xbf16>
    %4 = vector.shape_cast %3 : vector<1x8x16xbf16> to vector<8x16xbf16>
    %c0_3 = arith.constant 0 : index
    %c0_4 = arith.constant 0 : index
    %c0_5 = arith.constant 0 : index
    %5 = vector.load %arg3[%c0_3, %c0_4, %c0_5] : memref<4x16x512xbf16, #tpu.memory_space<vmem>>, vector<1x16x512xbf16>
    %6 = vector.shape_cast %5 : vector<1x16x512xbf16> to vector<16x512xbf16>
    %cst = arith.constant dense<0.000000e+00> : vector<8x512xf32>
    %7 = tpu.matmul %4, %6, %cst {dimension_numbers = #tpu.dot_dimension_numbers<[1], [0], [0], [1], [0, 0, 1, 1], [], []>} : vector<8x16xbf16>, vector<16x512xbf16>, vector<8x512xf32> -> vector<8x512xf32>
    %8 = vector.extract_strided_slice %2 {offsets = [1, 0, 0], sizes = [1, 8, 16], strides = [1, 1, 1]} : vector<4x8x16xbf16> to vector<1x8x16xbf16>
    %9 = vector.shape_cast %8 : vector<1x8x16xbf16> to vector<8x16xbf16>
    %c1 = arith.constant 1 : index
    %c0_6 = arith.constant 0 : index
    %c0_7 = arith.constant 0 : index
    %10 = vector.load %arg3[%c1, %c0_6, %c0_7] : memref<4x16x512xbf16, #tpu.memory_space<vmem>>, vector<1x16x512xbf16>
    %11 = vector.shape_cast %10 : vector<1x16x512xbf16> to vector<16x512xbf16>
    %cst_8 = arith.constant dense<0.000000e+00> : vector<8x512xf32>
    %12 = tpu.matmul %9, %11, %cst_8 {dimension_numbers = #tpu.dot_dimension_numbers<[1], [0], [0], [1], [0, 0, 1, 1], [], []>} : vector<8x16xbf16>, vector<16x512xbf16>, vector<8x512xf32> -> vector<8x512xf32>
    %13 = arith.addf %7, %12 : vector<8x512xf32>
    %14 = vector.extract_strided_slice %2 {offsets = [2, 0, 0], sizes = [1, 8, 16], strides = [1, 1, 1]} : vector<4x8x16xbf16> to vector<1x8x16xbf16>
    %15 = vector.shape_cast %14 : vector<1x8x16xbf16> to vector<8x16xbf16>
    %c2 = arith.constant 2 : index
    %c0_9 = arith.constant 0 : index
    %c0_10 = arith.constant 0 : index
    %16 = vector.load %arg3[%c2, %c0_9, %c0_10] : memref<4x16x512xbf16, #tpu.memory_space<vmem>>, vector<1x16x512xbf16>
    %17 = vector.shape_cast %16 : vector<1x16x512xbf16> to vector<16x512xbf16>
    %cst_11 = arith.constant dense<0.000000e+00> : vector<8x512xf32>
    %18 = tpu.matmul %15, %17, %cst_11 {dimension_numbers = #tpu.dot_dimension_numbers<[1], [0], [0], [1], [0, 0, 1, 1], [], []>} : vector<8x16xbf16>, vector<16x512xbf16>, vector<8x512xf32> -> vector<8x512xf32>
    %19 = arith.addf %13, %18 : vector<8x512xf32>
    %20 = vector.extract_strided_slice %2 {offsets = [3, 0, 0], sizes = [1, 8, 16], strides = [1, 1, 1]} : vector<4x8x16xbf16> to vector<1x8x16xbf16>
    %21 = vector.shape_cast %20 : vector<1x8x16xbf16> to vector<8x16xbf16>
    %c3 = arith.constant 3 : index
    %c0_12 = arith.constant 0 : index
    %c0_13 = arith.constant 0 : index
    %22 = vector.load %arg3[%c3, %c0_12, %c0_13] : memref<4x16x512xbf16, #tpu.memory_space<vmem>>, vector<1x16x512xbf16>
    %23 = vector.shape_cast %22 : vector<1x16x512xbf16> to vector<16x512xbf16>
    %cst_14 = arith.constant dense<0.000000e+00> : vector<8x512xf32>
    %24 = tpu.matmul %21, %23, %cst_14 {dimension_numbers = #tpu.dot_dimension_numbers<[1], [0], [0], [1], [0, 0, 1, 1], [], []>} : vector<8x16xbf16>, vector<16x512xbf16>, vector<8x512xf32> -> vector<8x512xf32>
    %25 = arith.addf %19, %24 : vector<8x512xf32>
    %26 = vector.extract_strided_slice %25 {offsets = [0, 0], sizes = [8, 16], strides = [1, 1]} : vector<8x512xf32> to vector<8x16xf32>
    %c0_15 = arith.constant 0 : index
    %27 = memref.load %arg4[%c0_15] : memref<4xf32, #tpu.memory_space<smem>>
    %28 = vector.broadcast %27 : f32 to vector<8x16xf32>
    %29 = arith.addf %26, %28 : vector<8x16xf32>
    %30 = vector.extract_strided_slice %1 {offsets = [0, 0, 0], sizes = [1, 8, 16], strides = [1, 1, 1]} : vector<4x8x16xf32> to vector<1x8x16xf32>
    %31 = vector.shape_cast %30 : vector<1x8x16xf32> to vector<8x16xf32>
    %32 = arith.addf %29, %31 : vector<8x16xf32>
    %cst_16 = arith.constant 0.000000e+00 : f32
    %33 = vector.broadcast %cst_16 : f32 to vector<8x16xf32>
    %34 = arith.maximumf %32, %33 : vector<8x16xf32>
    %c0_17 = arith.constant 0 : index
    %c0_18 = arith.constant 0 : index
    %c0_19 = arith.constant 0 : index
    %c0_20 = arith.constant 0 : index
    %35 = vector.load %arg5[%c0_17, %c0_18, %c0_19, %c0_20] : memref<1x4x8x16xf32, #tpu.memory_space<vmem>>, vector<1x1x8x16xf32>
    %36 = vector.shape_cast %35 : vector<1x1x8x16xf32> to vector<8x16xf32>
    %37 = vector.shape_cast %34 : vector<8x16xf32> to vector<1x1x8x16xf32>
    tpu.vector_store %arg5[%c0_17, %c0_18, %c0_19, %c0_20], %37 {strides = array<i32>} : memref<1x4x8x16xf32, #tpu.memory_space<vmem>>, vector<1x1x8x16xf32>,
    %38 = vector.extract_strided_slice %25 {offsets = [0, 128], sizes = [8, 16], strides = [1, 1]} : vector<8x512xf32> to vector<8x16xf32>
    %c1_21 = arith.constant 1 : index
    %39 = memref.load %arg4[%c1_21] : memref<4xf32, #tpu.memory_space<smem>>
    %40 = vector.broadcast %39 : f32 to vector<8x16xf32>
    %41 = arith.addf %38, %40 : vector<8x16xf32>
    %42 = vector.extract_strided_slice %1 {offsets = [1, 0, 0], sizes = [1, 8, 16], strides = [1, 1, 1]} : vector<4x8x16xf32> to vector<1x8x16xf32>
    %43 = vector.shape_cast %42 : vector<1x8x16xf32> to vector<8x16xf32>
    %44 = arith.addf %41, %43 : vector<8x16xf32>
    %cst_22 = arith.constant 0.000000e+00 : f32
    %45 = vector.broadcast %cst_22 : f32 to vector<8x16xf32>
    %46 = arith.maximumf %44, %45 : vector<8x16xf32>
    %c0_23 = arith.constant 0 : index
    %c1_24 = arith.constant 1 : index
    %c0_25 = arith.constant 0 : index
    %c0_26 = arith.constant 0 : index
    %47 = vector.load %arg5[%c0_23, %c1_24, %c0_25, %c0_26] : memref<1x4x8x16xf32, #tpu.memory_space<vmem>>, vector<1x1x8x16xf32>
    %48 = vector.shape_cast %47 : vector<1x1x8x16xf32> to vector<8x16xf32>
    %49 = vector.shape_cast %46 : vector<8x16xf32> to vector<1x1x8x16xf32>
    tpu.vector_store %arg5[%c0_23, %c1_24, %c0_25, %c0_26], %49 {strides = array<i32>} : memref<1x4x8x16xf32, #tpu.memory_space<vmem>>, vector<1x1x8x16xf32>,
    %50 = vector.extract_strided_slice %25 {offsets = [0, 256], sizes = [8, 16], strides = [1, 1]} : vector<8x512xf32> to vector<8x16xf32>
    %c2_27 = arith.constant 2 : index
    %51 = memref.load %arg4[%c2_27] : memref<4xf32, #tpu.memory_space<smem>>
    %52 = vector.broadcast %51 : f32 to vector<8x16xf32>
    %53 = arith.addf %50, %52 : vector<8x16xf32>
    %54 = vector.extract_strided_slice %1 {offsets = [2, 0, 0], sizes = [1, 8, 16], strides = [1, 1, 1]} : vector<4x8x16xf32> to vector<1x8x16xf32>
    %55 = vector.shape_cast %54 : vector<1x8x16xf32> to vector<8x16xf32>
    %56 = arith.addf %53, %55 : vector<8x16xf32>
    %cst_28 = arith.constant 0.000000e+00 : f32
    %57 = vector.broadcast %cst_28 : f32 to vector<8x16xf32>
    %58 = arith.maximumf %56, %57 : vector<8x16xf32>
    %c0_29 = arith.constant 0 : index
    %c2_30 = arith.constant 2 : index
    %c0_31 = arith.constant 0 : index
    %c0_32 = arith.constant 0 : index
    %59 = vector.load %arg5[%c0_29, %c2_30, %c0_31, %c0_32] : memref<1x4x8x16xf32, #tpu.memory_space<vmem>>, vector<1x1x8x16xf32>
    %60 = vector.shape_cast %59 : vector<1x1x8x16xf32> to vector<8x16xf32>
    %61 = vector.shape_cast %58 : vector<8x16xf32> to vector<1x1x8x16xf32>
    tpu.vector_store %arg5[%c0_29, %c2_30, %c0_31, %c0_32], %61 {strides = array<i32>} : memref<1x4x8x16xf32, #tpu.memory_space<vmem>>, vector<1x1x8x16xf32>,
    %62 = vector.extract_strided_slice %25 {offsets = [0, 384], sizes = [8, 16], strides = [1, 1]} : vector<8x512xf32> to vector<8x16xf32>
    %c3_33 = arith.constant 3 : index
    %63 = memref.load %arg4[%c3_33] : memref<4xf32, #tpu.memory_space<smem>>
    %64 = vector.broadcast %63 : f32 to vector<8x16xf32>
    %65 = arith.addf %62, %64 : vector<8x16xf32>
    %66 = vector.extract_strided_slice %1 {offsets = [3, 0, 0], sizes = [1, 8, 16], strides = [1, 1, 1]} : vector<4x8x16xf32> to vector<1x8x16xf32>
    %67 = vector.shape_cast %66 : vector<1x8x16xf32> to vector<8x16xf32>
    %68 = arith.addf %65, %67 : vector<8x16xf32>
    %cst_34 = arith.constant 0.000000e+00 : f32
    %69 = vector.broadcast %cst_34 : f32 to vector<8x16xf32>
    %70 = arith.maximumf %68, %69 : vector<8x16xf32>
    %c0_35 = arith.constant 0 : index
    %c3_36 = arith.constant 3 : index
    %c0_37 = arith.constant 0 : index
    %c0_38 = arith.constant 0 : index
    %71 = vector.load %arg5[%c0_35, %c3_36, %c0_37, %c0_38] : memref<1x4x8x16xf32, #tpu.memory_space<vmem>>, vector<1x1x8x16xf32>
    %72 = vector.shape_cast %71 : vector<1x1x8x16xf32> to vector<8x16xf32>
    %73 = vector.shape_cast %70 : vector<8x16xf32> to vector<1x1x8x16xf32>
    tpu.vector_store %arg5[%c0_35, %c3_36, %c0_37, %c0_38], %73 {strides = array<i32>} : memref<1x4x8x16xf32, #tpu.memory_space<vmem>>, vector<1x1x8x16xf32>,
    return
  }
  func.func @transform_0(%arg0: i32, %arg1: i32) -> (i32, i32, i32, i32) {
    %c0_i32 = arith.constant 0 : i32
    %c0_i32_0 = arith.constant 0 : i32
    %c0_i32_1 = arith.constant 0 : i32
    return %arg0, %c0_i32, %arg1, %c0_i32_0 : i32, i32, i32, i32
  }
  func.func @transform_1(%arg0: i32, %arg1: i32) -> (i32, i32, i32) {
    %c0_i32 = arith.constant 0 : i32
    %c0_i32_0 = arith.constant 0 : i32
    %c0_i32_1 = arith.constant 0 : i32
    %c0_i32_2 = arith.constant 0 : i32
    return %c0_i32, %c0_i32_0, %c0_i32_1 : i32, i32, i32
  }
  func.func @transform_2(%arg0: i32, %arg1: i32) -> i32 {
    %c0_i32 = arith.constant 0 : i32
    %c0_i32_0 = arith.constant 0 : i32
    return %c0_i32 : i32
  }
  func.func @transform_3(%arg0: i32, %arg1: i32) -> (i32, i32, i32, i32) {
    %c0_i32 = arith.constant 0 : i32
    %c0_i32_0 = arith.constant 0 : i32
    %c0_i32_1 = arith.constant 0 : i32
    return %arg0, %c0_i32, %arg1, %c0_i32_0 : i32, i32, i32, i32
  }
}

</mosaic_0001>

<bundles_post_ra>
// kernel: tpu_custom_call.1
= control target key start
LH: loop header
LB: loop body
LE: loop exit
PB: predicated region body
PF: predicated region fallthrough
CT: control target
= control target key end

     0   :  { %8 = vsyncpa [#allocation3], 0  ;;  %s1484_s0 = inlined_call_operand.hbm [shape: f32[2,4,8,16], index: 0, kind: input, shape index: {}]   ;;  %s1485_s1 = inlined_call_operand.hbm [shape: bf16[4,16,512], index: 1, kind: input, shape index: {}]   ;;  %s1486_s2 = inlined_call_operand.vmem [shape: f32[4], index: 2, kind: input, shape index: {}]   ;;  %s1487_s3 = inlined_call_operand.hbm [shape: f32[2,4,8,16], index: 3, kind: output, shape index: {}]  }
   0x1   :  { %10 = vsyncpa [#allocation3 + $0x1], 0 }
   0x2   :  { %11 = vsyncpa [#allocation7], 0 }
   0x3   :  { %12 = vsyncpa [#allocation5], 0 }
   0x4   :  { %13 = vsyncpa [#allocation4], 0 }
   0x5   :  { %15 = vsyncpa [#allocation4 + $0x1], 0  ;;  %s1202_s12 = smov 0   ;;  %s1204_s13 = smov 0  }
   0x6   :  { %s1206_s14 = smov 0   ;;  %s1208_s15 = smov 0  }
   0x7   :  { %s1210_s16 = smov 0   ;;  %s1212_s17 = smov 0  }
   0x8 LB: > { %s841_s18 = sadd.s32 4294967295, %s1169_s17   ;;  %s842_s19 = sadd.s32 4294967294, %s1169_s17   ;;  %s1169_s17 = sphi %s1212_s17, %s21_s17   ;;  %s1165_s16 = sphi %s1210_s16, %s1510_s16   ;;  %s1161_s15 = sphi %s1208_s15, %s1509_s15   ;;  %s1157_s14 = sphi %s1206_s14, %s1508_s14   ;;  %s1153_s13 = sphi %s1204_s13, %s1507_s13   ;;  %s1149_s12 = sphi %s1202_s12, %s1506_s12  }
   0x9   : > { %p55_p0 = scmp.ne.s32.totalorder %s1153_s13, %s1149_s12  ;;  %p1236_p1 = scmp.eq.s32.totalorder %s841_s18, 0 }
   0xa   : > { %p1240_p2 = scmp.eq.s32.totalorder %s841_s18, 1  ;;  %p129_p3 = scmp.eq.s32.totalorder %s842_s19, 1 }
   0xb   : > { %s1492_s20 = scalar_select %p1236_p1, 1, 0 }
   0xc   : > { %s1493_s21 = scalar_select %p1240_p2, 1, 0 }
   0xd   : > { %p1246_p4 = por %p1236_p1, %p55_p0  ;;  %p843_p5 = scmp.ge.s32.totalorder %s1169_s17, 1 }
   0xe   : > { %p1251_p6 = por %p129_p3, %p55_p0  ;;  %p136_p7 = scmp.lt.s32.totalorder %s1169_s17, 3 }
   0xf   : > { %s1494_s22 = scalar_select %p1246_p4, 1, 0 }
  0x10   : > { %s1495_s23 = scalar_select %p1251_p6, 1, 0 }
  0x11   : > { %p1256_p8 = pnand %p843_p5, %p136_p7  ;;  %s1171_s25 = smov [#allocation6]  }
  0x12   : > { %s148_s26 = sshll.u32 %s1171_s25, 4  ;;  %s162_s29 = sshll.u32 %s1486_s2, 4  ;;  %s149_s26 = int_to_ptr.vmem [resolvable:$true] %s148_s26  ;;  %s1272_s29 = int_to_ptr.vmem [resolvable:$true] %s162_s29 }
  0x13   : > { %s1496_s24 = scalar_select %p1256_p8, 1, 0 }
  0x14   : > { %p904_p9 = pneg %p1256_p8  ;;  %s1006_s6 = scalar_lea.hbm %s1485_s1, 2048 }
  0x15   : > { %p1007_p12 = scmp.ne.s32.totalorder %s1485_s1, %s1006_s6  ;;  %p1013_p5 = scmp.lt.u32.totalorder %s1006_s6, %s1485_s1 }
  0x16   : > { %p1268_p11 = pnand %p904_p9, %p1236_p1 }
  0x18   : > { %p1008_p13 = pneg %p1268_p11 }
  0x1a   : > { %p1009_p0 = pnand %p1008_p13, %p1007_p12 }
  0x1c   : > { %p1010_p3 = pneg %p1009_p0 }
  0x1e   : > { %p1015_p7 = pnand %p1013_p5, %p1010_p3 }
  0x20   : > { %1018 = shalt.err (!%p1015_p7)
}
  0x21   : > { %s1019_s11 = scalar_lea.vmem %s149_s26, 2048  ;;  %p1027_p1 = scmp.lt.s32.totalorder %s149_s26, %s149_s26 }
  0x22   : > { %p1020_p9 = scmp.ne.s32.totalorder %s149_s26, %s1019_s11  ;;  %p1028_p4 = scmp.lt.s32.totalorder %s1019_s11, %s1019_s11 }
  0x24   : > { %p1022_p10 = pnand %p1020_p9, %p1008_p13  ;;  %p1029_p8 = por %p1028_p4, %p1027_p1 }
  0x26   : > { %p1023_p6 = pneg %p1022_p10 }
  0x28   : > { %p1030_p2 = pnand %p1029_p8, %p1023_p6 }
  0x2a   : > { %1033 = shalt.err (!%p1030_p2)
}
  0x2b   : > { %s1172_s18 = smov 256   ;;  %s1173_s19 = smov 16  }
  0x2c   : > { %907 = dma.hbm_to_vmem [thread:$0]  (!%p1268_p11), %s1485_s1, 2048, %s149_s26, [#allocation7], %s1172_s18, %s1172_s18, %s1173_s19  }
  0x2d   : > { %s1034_s28 = scalar_lea.vmem %s1272_s29, 16  ;;  %p1042_p2 = scmp.lt.s32.totalorder %s1272_s29, %s1272_s29 }
  0x2e   : > { %p1035_p12 = scmp.ne.s32.totalorder %s1272_s29, %s1034_s28  ;;  %p1043_p4 = scmp.lt.s32.totalorder %s1034_s28, %s1034_s28 }
  0x30   : > { %p1037_p10 = pnand %p1035_p12, %p1008_p13  ;;  %p1044_p6 = por %p1043_p4, %p1042_p2 }
  0x32   : > { %p1038_p1 = pneg %p1037_p10 }
  0x34   : > { %p1045_p8 = pnand %p1044_p6, %p1038_p1 }
  0x36   : > { %1048 = shalt.err (!%p1045_p8)
}
  0x37   : > { %s1174_s4 = smov [#allocation8]   ;;  %s33_s26 = sadd.s32 1, %s1165_s16 }
  0x38   : > { %910 = dma.vmem_to_smem (!%p1268_p11), %s1272_s29, 16, %s1174_s4, [#allocation5]  }
  0x39   : > { %s42_s5 = sadd.s32 1, %s1157_s14  ;;  %p35_p13 = scmp.ge.s32.totalorder %s33_s26, 2 }
  0x3a   : > { %p49_p0 = scmp.ne.s32.totalorder %s1157_s14, %s1153_s13  ;;  %p50_p3 = scmp.eq.s32.totalorder %s1169_s17, 0 }
  0x3b   : > { %p921_p5 = scmp.lt.s32.totalorder %s1169_s17, 2  ;;  %s1512_s26 = smov (%p35_p13, %s33_s26), 0 }
  0x3c   : > { %p51_p7 = por %p50_p3, %p49_p0  ;;  %p1498_p9 = scmp.ne.s32.totalorder %s1493_s21, 0 }
  0x3d   : > { %s37_s6 = ssub.s32 %s1165_s16, %s1512_s26  ;;  %s173_s7 = sand.u32 1, %s1157_s14  }
  0x3e   : > { %p1316_p12 = por %p1498_p9, %p49_p0  ;;  %p40_p10 = scmp.eq.s32.totalorder %s37_s6, 0 }
  0x3f   : > { %s847_s29 = sshll.u32 %s173_s7, 5  ;;  %s890_s8 = sshll.u32 %s1165_s16, 9 }
  0x40   : > { %s1325_s9 = scalar_select %p40_p10, %s1157_s14, %s42_s5  }
  0x41   : > { %s1330_s18 = scalar_lea.hbm %s1484_s0, %s890_s8  ;;  %s177_s21 = scalar_lea.vmem [#allocation2], %s847_s29 }
  0x42   : > { %s185_s19 = sshll.u32 %s177_s21, 4  ;;  %p1334_p11 = pnand %p921_p5, %p51_p7  ;;  %s1338_s19 = int_to_ptr.vmem [resolvable:$true] %s185_s19 }
  0x43   : > { %s1340_s27 = scalar_lea.sflag [#allocation3], %s173_s7  ;;  %s1049_s28 = scalar_lea.hbm %s1330_s18, 512 }
  0x44   : > { %p1050_p1 = scmp.ne.s32.totalorder %s1330_s18, %s1049_s28  ;;  %p1051_p2 = pneg %p1334_p11 }
  0x45   : > { %s1054_s6 = scalar_lea.hbm %s1484_s0, 1024  ;;  %p1055_p8 = scmp.lt.u32.totalorder %s1330_s18, %s1484_s0 }
  0x46   : > { %p1052_p4 = pnand %p1051_p2, %p1050_p1  ;;  %p1056_p13 = scmp.lt.u32.totalorder %s1054_s6, %s1049_s28 }
  0x47   : > { %p1058_p3 = scmp.lt.u32.totalorder %s1049_s28, %s1330_s18 }
  0x48   : > { %p1053_p6 = pneg %p1052_p4  ;;  %p1057_p0 = por %p1056_p13, %p1055_p8 }
  0x4a   : > { %p1059_p5 = por %p1058_p3, %p1057_p0 }
  0x4c   : > { %p1060_p7 = pnand %p1059_p5, %p1053_p6 }
  0x4e   : > { %1063 = shalt.err (!%p1060_p7)
}
  0x4f   : > { %s1064_s7 = scalar_lea.vmem %s1338_s19, 512  ;;  %s1175_s10 = smov [#allocation2]  }
  0x50   : > { %p1065_p9 = scmp.ne.s32.totalorder %s1338_s19, %s1064_s7  ;;  %s1069_s11 = sshll.u32 %s1175_s10, 4  ;;  %s1070_s11 = int_to_ptr.vmem [resolvable:$false] %s1069_s11 }
  0x51   : > { %s1071_s21 = scalar_lea.vmem %s1070_s11, 1024  ;;  %p1072_p4 = scmp.lt.s32.totalorder %s1338_s19, %s1070_s11 }
  0x52   : > { %p1067_p10 = pnand %p1065_p9, %p1051_p2  ;;  %p1073_p8 = scmp.lt.s32.totalorder %s1071_s21, %s1064_s7 }
  0x54   : > { %p1068_p1 = pneg %p1067_p10  ;;  %p1074_p13 = por %p1073_p8, %p1072_p4 }
  0x56   : > { %p1075_p0 = pnand %p1074_p13, %p1068_p1 }
  0x58   : > { %1078 = shalt.err (!%p1075_p0)
}
  0x59   : > { %s1176_s28 = smov 128   ;;  %s1177_s4 = smov 8  }
  0x5a   : > { %914 = dma.hbm_to_vmem [thread:$0]  (!%p1334_p11), %s1330_s18, 512, %s1338_s19, %s1340_s27, %s1176_s28, %s1176_s28, %s1177_s4  }
  0x5b   : > { %p1501_p2 = scmp.ne.s32.totalorder %s1496_s24, 0 }
  0x5c   : > { %s1371_s5 = sand.u32 (!%p1501_p2), 1, %s1153_s13   ;;  %p1502_p6 = scmp.ne.s32.totalorder (!%p1501_p2), %s1494_s22, 0 }
  0x5d   : > { %197 = sbr.rel (%p1501_p2) target bundleno = 374 (0x176), region = 32  ;;  %s851_s6 = sshll.u32 (!%p1501_p2), %s1371_s5, 5 }
  0x5e   : > { %s200_s29 = scalar_lea.sflag (!%p1501_p2), [#allocation3], %s1371_s5  ;;  %s1377_s8 = scalar_lea.vmem (!%p1501_p2), [#allocation2], %s851_s6 }
  0x64   : > { %1132 = dma.done.wait (%p1502_p6), %s200_s29, 512  }
  0x65   : > { %1134 = vsyncadd (%p1502_p6), %s200_s29, 4294966784  ;;  %p1503_p11 = scmp.ne.s32.totalorder %s1492_s20, 0 }
  0x67   : > { %1136 = dma.done.wait (%p1503_p11), [#allocation7], 2048  }
  0x68   : > { %1138 = vsyncadd (%p1503_p11), [#allocation7], 4294965248 }
  0x69   : > { %1140 = dma.done.wait (%p1503_p11), [#allocation5], 16  }
  0x6a   : > { %1142 = vsyncadd (%p1503_p11), [#allocation5], 4294967280 }
  0x6b   : > { %216 = sfence }
  0x6c   : > { %v982_v0 = vld [vmem:[#allocation6 + $0x24] ss:$16 sps:$4 sm:$0xff]   ;;  %v984_v1 = vld [vmem:[#allocation6 + $0x2c] ss:$16 sps:$4 sm:$0xff]   ;;  %v1178_v2 = vmov 0   ;;  %vm273_vm0 = vcmask 130048  }
  0x6d   : > { %309 = vmatprep.mubr.bf16.mxu0 %v1178_v2  ;;  %350 = vmatprep.mubr.bf16.mxu1 %v1178_v2  ;;  %v986_v3 = vld [vmem:[#allocation6 + $0x20] ss:$16 sps:$4 sm:$0xff]   ;;  %v987_v4 = vld [vmem:[#allocation6 + $0x28] ss:$16 sps:$4 sm:$0xff]   ;;  %v990_v8 = vld [vmem:[#allocation6 + $0x4] ss:$16 sps:$4 sm:$0xff]  }
  0x6e   : > { %277 = vmatprep.subr.bf16.mxu0 %v982_v0  ;;  %v1392_v5 = vld [vmem:[%s1377_s8 + $0x8] sm:$0xff]  ;;  %318 = vmatprep.subr.bf16.mxu1 %v984_v1  ;;  %v988_v7 = vld [vmem:[#allocation6] ss:$16 sps:$4 sm:$0xff]   ;;  %v996_v11 = vld [vmem:[#allocation6 + $0x44] ss:$16 sps:$4 sm:$0xff]   ;;  %s692_s20 = sld [smem:[#allocation8]] }
  0x6f   : > { %v241_v6 = vpack.c.bf16 %v1392_v5, %v1392_v5  ;;  %278 = vmatpush1.bf16.msra.mxu0 %v986_v3  ;;  %319 = vmatpush1.bf16.msra.mxu1 %v987_v4  ;;  %v991_v9 = vld [vmem:[#allocation6 + $0x8] ss:$16 sps:$4 sm:$0xff]   ;;  %v993_v10 = vld [vmem:[#allocation6 + $0xc] ss:$16 sps:$4 sm:$0xff]   ;;  %v1399_v12 = vld [vmem:[%s1377_s8] sm:$0xff]  ;;  %s881_s22 = sld [smem:[#allocation8 + $0x2]] }
  0x70   : > { %382 = vmatprep.subr.bf16.mxu0 %v990_v8  ;;  %423 = vmatprep.subr.bf16.mxu1 %v993_v10  ;;  %v999_v13 = vld [vmem:[#allocation6 + $0x4c] ss:$16 sps:$4 sm:$0xff]   ;;  %v240_v14 = vpack.c.bf16 %v1399_v12, %v1399_v12  ;;  %v994_v15 = vld [vmem:[#allocation6 + $0x40] ss:$16 sps:$4 sm:$0xff]   ;;  %v997_v16 = vld [vmem:[#allocation6 + $0x48] ss:$16 sps:$4 sm:$0xff]  }
  0x71   : > { %v1002_v17 = vld [vmem:[#allocation6 + $0x64] ss:$16 sps:$4 sm:$0xff]   ;;  %v1005_v18 = vld [vmem:[#allocation6 + $0x6c] ss:$16 sps:$4 sm:$0xff]   ;;  %v1000_v21 = vld [vmem:[#allocation6 + $0x60] ss:$16 sps:$4 sm:$0xff]  }
  0x72   : > { %859 = vmatmul.mubr.msk.bf16.vlgmr.msra.gmra.mrb[0].mxu0 %vm273_vm0, %v241_v6  ;;  %860 = vmatmul.mubr.msk.bf16.vlgmr.msra.gmra.mrb[0].mxu1 %vm273_vm0, %v241_v6  ;;  %v1406_v19 = vld [vmem:[%s1377_s8 + $0x10] sm:$0xff]  ;;  %v1003_v22 = vld [vmem:[#allocation6 + $0x68] ss:$16 sps:$4 sm:$0xff]   ;;  %s879_s24 = sld [smem:[#allocation8 + $0x1]]  ;;  %s883_s18 = sld [smem:[#allocation8 + $0x3]] }
  0x73   : > { %383 = vmatpush1.bf16.msra.mxu0 %v988_v7  ;;  %424 = vmatpush1.bf16.msra.mxu1 %v991_v9  ;;  %v242_v20 = vpack.c.bf16 %v1406_v19, %v1406_v19  ;;  %v1413_v23 = vld [vmem:[%s1377_s8 + $0x18] sm:$0xff]  ;;  %s891_s19 = sshll.u32 %s1161_s15, 9  ;;  %s234_s25 = scalar_lea.vmem [#allocation9], %s851_s6 }
  0x74   : > { %414 = vmatprep.mubr.bf16.mxu0 %v1178_v2  ;;  %455 = vmatprep.mubr.bf16.mxu1 %v1178_v2  ;;  %v243_v24 = vpack.c.bf16 %v1413_v23, %v1413_v23  ;;  %v693_v58 = vstv %s692_s20  ;;  %s734_s27 = sshll.u32 %s234_s25, 4  ;;  %s1429_s11 = scalar_lea.hbm %s1487_s3, %s891_s19  ;;  %s1431_s27 = int_to_ptr.vmem [resolvable:$true] %s734_s27 }
  0x75   : > { %492 = vmatprep.subr.bf16.mxu0 %v996_v11  ;;  %533 = vmatprep.subr.bf16.mxu1 %v999_v13  ;;  %v706_v60 = vstv %s881_s22  ;;  %s720_s15 = scalar_lea.sflag [#allocation4], %s1371_s5  ;;  %s1079_s21 = scalar_lea.vmem %s1431_s27, 512 }
  0x76   : > { %p1080_p3 = scmp.ne.s32.totalorder %s1431_s27, %s1079_s21  ;;  %s1179_s28 = smov [#allocation9]  }
  0x77   : > { %s1083_s4 = sshll.u32 %s1179_s28, 4  ;;  %s1084_s4 = int_to_ptr.vmem [resolvable:$false] %s1083_s4 }
  0x78   : > { %v699_v0 = vstv %s879_s24  ;;  %p1081_p5 = pnand %p1080_p3, %p1316_p12  ;;  %s1085_s6 = scalar_lea.vmem %s1084_s4, 1024 }
  0x79   : > { %p1086_p9 = scmp.lt.s32.totalorder %s1431_s27, %s1084_s4  ;;  %p1087_p10 = scmp.lt.s32.totalorder %s1085_s6, %s1079_s21 }
  0x7a   : > { %865 = vmatmul.mubr.msk.bf16.vlgmr.msra.gmra.mrb[4].mxu0 %vm273_vm0, %v240_v14  ;;  %866 = vmatmul.mubr.msk.bf16.vlgmr.msra.gmra.mrb[4].mxu1 %vm273_vm0, %v240_v14  ;;  %p1082_p7 = pneg %p1081_p5 }
  0x7b   : > { %493 = vmatpush1.bf16.msra.mxu0 %v994_v15  ;;  %534 = vmatpush1.bf16.msra.mxu1 %v997_v16  ;;  %p1088_p1 = por %p1087_p10, %p1086_p9 }
  0x7c   : > { %524 = vmatprep.mubr.bf16.mxu0 %v1178_v2  ;;  %565 = vmatprep.mubr.bf16.mxu1 %v1178_v2 }
  0x7d   : > { %606 = vmatprep.subr.bf16.mxu0 %v1002_v17  ;;  %647 = vmatprep.subr.bf16.mxu1 %v1005_v18  ;;  %p1089_p4 = pnand %p1088_p1, %p1082_p7 }
  0x82   : > { %871 = vmatmul.mubr.msk.bf16.vlgmr.msra.gmra.mrb[8].mxu0 %vm273_vm0, %v242_v20  ;;  %872 = vmatmul.mubr.msk.bf16.vlgmr.msra.gmra.mrb[8].mxu1 %vm273_vm0, %v242_v20 }
  0x83   : > { %607 = vmatpush1.bf16.msra.mxu0 %v1000_v21  ;;  %648 = vmatpush1.bf16.msra.mxu1 %v1003_v22 }
  0x84   : > { %638 = vmatprep.mubr.bf16.mxu0 %v1178_v2  ;;  %679 = vmatprep.mubr.bf16.mxu1 %v1178_v2  ;;  %v713_v2 = vstv %s883_s18 }
  0x8a   : > { %877 = vmatmul.mubr.msk.bf16.vlgmr.msra.gmra.mrb[12].mxu0 %vm273_vm0, %v243_v24  ;;  %878 = vmatmul.mubr.msk.bf16.vlgmr.msra.gmra.mrb[12].mxu1 %vm273_vm0, %v243_v24 }
 0x145   : > { %v311_v25 = vpop.f32.mrb[0].mxu0  ;;  %v352_v26 = vpop.f32.mrb[0].mxu1 }
 0x146   : > { %v313_v27 = vpop.f32.mrb[1].mxu0  ;;  %v354_v28 = vpop.f32.mrb[1].mxu1 }
 0x147   : > { %v315_v29 = vpop.f32.mrb[2].mxu0  ;;  %v356_v30 = vpop.f32.mrb[2].mxu1 }
 0x148   : > { %v316_v31 = vpop.f32.mrb[3].mxu0  ;;  %v357_v32 = vpop.f32.mrb[3].mxu1 }
 0x14d   : > { %v416_v33 = vpop.f32.mrb[4].mxu0  ;;  %v457_v34 = vpop.f32.mrb[4].mxu1 }
 0x14e   : > { %v417_v35 = vadd.f32 %v416_v33, %v311_v25  ;;  %v458_v36 = vadd.f32 %v457_v34, %v352_v26  ;;  %v418_v37 = vpop.f32.mrb[5].mxu0  ;;  %v459_v38 = vpop.f32.mrb[5].mxu1 }
 0x14f   : > { %v419_v39 = vadd.f32 %v418_v37, %v313_v27  ;;  %v460_v40 = vadd.f32 %v459_v38, %v354_v28  ;;  %v420_v41 = vpop.f32.mrb[6].mxu0  ;;  %v461_v42 = vpop.f32.mrb[6].mxu1 }
 0x150   : > { %v421_v43 = vpop.f32.mrb[7].mxu0  ;;  %v462_v44 = vpop.f32.mrb[7].mxu1 }
 0x155   : > { %v526_v45 = vpop.f32.mrb[8].mxu0  ;;  %v567_v46 = vpop.f32.mrb[8].mxu1 }
 0x156   : > { %v574_v47 = vadd.f32 %v526_v45, %v417_v35  ;;  %v576_v48 = vadd.f32 %v567_v46, %v458_v36  ;;  %v528_v49 = vpop.f32.mrb[9].mxu0  ;;  %v569_v50 = vpop.f32.mrb[9].mxu1 }
 0x157   : > { %v575_v51 = vadd.f32 %v528_v49, %v419_v39  ;;  %v577_v52 = vadd.f32 %v569_v50, %v460_v40  ;;  %v530_v53 = vpop.f32.mrb[10].mxu0  ;;  %v571_v54 = vpop.f32.mrb[10].mxu1 }
 0x158   : > { %v531_v55 = vpop.f32.mrb[11].mxu0  ;;  %v572_v56 = vpop.f32.mrb[11].mxu1 }
 0x15d   : > { %v640_v57 = vpop.f32.mrb[12].mxu0  ;;  %v681_v59 = vpop.f32.mrb[12].mxu1 }
 0x15e   : > { %v688_v61 = vadd.f32 %v640_v57, %v574_v47  ;;  %v690_v62 = vadd.f32 %v681_v59, %v576_v48  ;;  %v642_v63 = vpop.f32.mrb[13].mxu0  ;;  %v683_v1 = vpop.f32.mrb[13].mxu1 }
 0x15f   : > { %v689_v3 = vadd.f32 %v642_v63, %v575_v51  ;;  %v691_v4 = vadd.f32 %v683_v1, %v577_v52  ;;  %v644_v6 = vpop.f32.mrb[14].mxu0  ;;  %v685_v7 = vpop.f32.mrb[14].mxu1 }
 0x160   : > { %v694_v8 = vadd.f32 %v693_v58, %v688_v61  ;;  %v707_v9 = vadd.f32 %v706_v60, %v690_v62  ;;  %v645_v10 = vpop.f32.mrb[15].mxu0  ;;  %v686_v11 = vpop.f32.mrb[15].mxu1 }
 0x161   : > { %v700_v13 = vadd.f32 %v699_v0, %v689_v3  ;;  %v714_v14 = vadd.f32 %v713_v2, %v691_v4 }
 0x162   : > { %v695_v15 = vadd.f32 %v694_v8, %v1399_v12  ;;  %v708_v16 = vadd.f32 %v707_v9, %v1406_v19 }
 0x163   : > { %v701_v17 = vadd.f32 %v700_v13, %v1392_v5  ;;  %v715_v18 = vadd.f32 %v714_v14, %v1413_v23 }
 0x164   : > { %v696_v20 = vmax.f32 %v695_v15, 0.0  ;;  %v709_v21 = vmax.f32 %v708_v16, 0.0 }
 0x165   : > { %v702_v12 = vmax.f32 %v701_v17, 0.0  ;;  %v716_v22 = vmax.f32 %v715_v18, 0.0 }
 0x166   : > { %697 = vst.msk [vmem:[%s234_s25] sm:$0xff] %vm273_vm0, %v696_v20  ;;  %882 = vst.msk [vmem:[%s234_s25 + $0x10] sm:$0xff] %vm273_vm0, %v709_v21 }
 0x167   : > { %880 = vst.msk [vmem:[%s234_s25 + $0x8] sm:$0xff] %vm273_vm0, %v702_v12  ;;  %884 = vst.msk [vmem:[%s234_s25 + $0x18] sm:$0xff] %vm273_vm0, %v716_v22 }
 0x168   : > { %1092 = shalt.err (!%p1089_p4)
}
 0x169   : > { %s1093_s29 = scalar_lea.hbm %s1429_s11, 512  ;;  %s1097_s22 = scalar_lea.hbm %s1487_s3, 1024 }
 0x16a   : > { %p1094_p8 = scmp.ne.s32.totalorder %s1429_s11, %s1093_s29  ;;  %p1098_p2 = scmp.lt.u32.totalorder %s1429_s11, %s1487_s3 }
 0x16b   : > { %p1099_p6 = scmp.lt.u32.totalorder %s1097_s22, %s1093_s29  ;;  %p1101_p3 = scmp.lt.u32.totalorder %s1093_s29, %s1429_s11 }
 0x16c   : > { %p1095_p13 = pnand %p1094_p8, %p1316_p12 }
 0x16d   : > { %p1100_p11 = por %p1099_p6, %p1098_p2 }
 0x16e   : > { %p1096_p0 = pneg %p1095_p13 }
 0x16f   : > { %p1102_p5 = por %p1101_p3, %p1100_p11 }
 0x171   : > { %p1103_p7 = pnand %p1102_p5, %p1096_p0 }
 0x173   : > { %1106 = shalt.err (!%p1103_p7)
}
 0x174   : > { %s1180_s19 = smov 128   ;;  %s1181_s25 = smov 8  }
 0x175   : > { %902 = dma.vmem_to_hbm [thread:$0]  (%p1316_p12), %s1431_s27, 512, %s1429_s11, %s720_s15, %s1180_s19, %s1180_s19, %s1181_s25  }
 0x176 PF: > { %s749_s7 = sand.u32 1, %s1149_s12   ;;  %p1504_p9 = scmp.ne.s32.totalorder %s1495_s23, 0 }
 0x177   : > { %p1505_p10 = scmp.ge.s32.totalorder %s1169_s17, 2  ;;  %s750_s10 = scalar_lea.sflag [#allocation4], %s749_s7 }
 0x179   : > { %p916_p1 = pnand %p1505_p10, %p1504_p9 }
 0x17b   : > { %1144 = dma.done.wait (!%p916_p1), %s750_s10, 512  }
 0x17c   : > { %1146 = vsyncadd (!%p916_p1), %s750_s10, 4294966784  ;;  %s21_s17 = sadd.s32 1, %s1169_s17   ;;  %s1506_s12 = smov %s1153_s13 }
 0x17d   : > { %p18_p4 = scmp.ge.s32.totalorder %s21_s17, 4   ;;  %s1507_s13 = smov %s1157_s14 }
 0x17e   : > { %s1508_s14 = smov %s1325_s9  ;;  %s1509_s15 = smov %s1165_s16 }
 0x17f   : > { %s1510_s16 = smov %s1512_s26  ;;  %20 = sbr.rel (!%p18_p4) target bundleno = 8 (0x8), region = 92 }
 0x186   :  { %755 = vsyncpa [#allocation3], 1 }
 0x187   :  { %757 = vsyncpa [#allocation3 + $0x1], 1 }
 0x188   :  { %758 = vsyncpa [#allocation7], 1 }
 0x189   :  { %759 = vsyncpa [#allocation4], 1 }
 0x18a   :  { %761 = vsyncpa [#allocation4 + $0x1], 1 }
 0x18b   :  { %762 = vsyncpa [#allocation5], 1 }
 0x18c   :  { %764 = vsyncpa [#allocation5 + $0x1], 1 }

</bundles_post_ra>
